<compile_context>
chip_gen: v6e
topology: v6e:2x2x1
jax: 0.10.0
libtpu: 0.0.40
codegen_flags: <defaults>
</compile_context>

<pallas_src>
import functools

import jax
import jax.numpy as jnp
import numpy as np
from jax.experimental import pallas as pl
from jax.experimental.pallas import tpu as pltpu


# ---------------------------------------------------------------------------
# Weight packing helpers (host/XLA side, done once per call).
# ---------------------------------------------------------------------------
def _pack_gate_cols(wf, wb):
    """(K, 4H) fwd + (K, 4H) bwd -> (K, 8H) with interleaved gate layout."""
    K, H4 = wf.shape
    H = H4 // 4
    wf4 = wf.reshape(K, 4, H)
    wb4 = wb.reshape(K, 4, H)
    return jnp.stack([wf4, wb4], axis=2).reshape(K, 8 * H)


def _pack_two_block(wf, wb):
    """(K,4H)+(K,4H) -> block-structured (2K, 8H): rows[0:K] drive the forward
    gate columns, rows[K:2K] drive the backward gate columns."""
    z = jnp.zeros_like(wf)
    top = _pack_gate_cols(wf, z)
    bot = _pack_gate_cols(z, wb)
    return jnp.concatenate([top, bot], axis=0)


# ---------------------------------------------------------------------------
# Fused kernel: input projection + bidirectional recurrence + Linear epilogue
# ---------------------------------------------------------------------------
def _bilstm_fused_kernel(x2_ref, wih_ref, bias_ref, whh_ref, wemb_ref,
                         bemb_ref, out_ref, hid_ref, *, T, B, H):
    H8 = 8 * H

    # --- Prologue: ONE GEMM gives both directions' input projections for all
    # time steps, already in per-step row order (fwd reads x[t], bwd reads
    # x[T-1-t]) thanks to the [x_t | x_{T-1-t}] feature concat + block weight.
    gx = (jnp.dot(x2_ref[...], wih_ref[...],
                  preferred_element_type=jnp.float32)
          + bias_ref[...])                              # (T*B, 8H), 2D

    # Lane mask over the packed gate axis selecting the tanh ("g") block.
    lane = jax.lax.broadcasted_iota(jnp.int32, (B, H8), 1)
    g_lanes = (lane >= 4 * H) & (lane < 6 * H)

    whh = whh_ref[...]          # loop-invariant: load once, reuse every step

    h = jnp.zeros((B, 2 * H), jnp.float32)   # [h_fwd | h_bwd]
    c = jnp.zeros((B, 2 * H), jnp.float32)   # [c_fwd | c_bwd]
    for t in range(T):          # static, tiny T -> fully unrolled
        gates = gx[t * B:(t + 1) * B, :] + jnp.dot(
            h, whh, preferred_element_type=jnp.float32)
        # Full-tile sigmoid + tanh blended by the lane mask (2 EUP launches).
        act = jnp.where(g_lanes, jnp.tanh(gates), jax.nn.sigmoid(gates))
        i = act[:, 0:2 * H]
        f = act[:, 2 * H:4 * H]
        g = act[:, 4 * H:6 * H]
        o = act[:, 6 * H:8 * H]
        c = f * c + i * g
        h = o * jnp.tanh(c)
        # Persist this step's hidden state straight into the VMEM slab
        # (static row offsets; uses the otherwise-idle vector-store slot and
        # keeps nothing but (h, c) live across the unrolled loop).
        hid_ref[t * B:(t + 1) * B, 0:H] = h[:, 0:H]               # fwd @ t
        hid_ref[(T - 1 - t) * B:(T - t) * B, H:2 * H] = h[:, H:]  # bwd @ T-1-t

    # --- Epilogue: single fused Linear(2H -> nOut) over all T*B rows. ---
    out_ref[...] = (jnp.dot(hid_ref[...], wemb_ref[...],
                            preferred_element_type=jnp.float32)
                    + bemb_ref[...])


def bidirectional_lstm_pallas(x, params):
    T, B, nIn = x.shape
    H = params["whh_f"].shape[0]
    nOut = params["w_emb_f"].shape[1]

    # Block-structured packed weights (built once per call in XLA).
    wih = _pack_two_block(params["wih_f"], params["wih_b"])      # (2*nIn, 8H)
    bias = _pack_gate_cols(params["bias_f"], params["bias_b"])   # (1, 8H)
    whh = _pack_two_block(params["whh_f"], params["whh_b"])      # (2H, 8H)
    wemb = jnp.concatenate([params["w_emb_f"], params["w_emb_b"]],
                           axis=0)                               # (2H, nOut)

    # [x_t | x_{T-1-t}] along features; flattened to 2D in the wrapper so the
    # kernel never reshapes a sublane-padded (T, B, .) array.
    x2 = jnp.concatenate([x, x[::-1]], axis=-1).reshape(T * B, 2 * nIn)

    kernel = functools.partial(_bilstm_fused_kernel, T=T, B=B, H=H)
    out = pl.pallas_call(
        kernel,
        out_shape=jax.ShapeDtypeStruct((T * B, nOut), jnp.float32),
        scratch_shapes=[pltpu.VMEM((T * B, 2 * H), jnp.float32)],
    )(x2, wih, bias, whh, wemb, params["b_emb"])
    return out.reshape(T, B, nOut)


# ---------------------------------------------------------------------------
# Pure-JAX reference mirroring torch.nn.LSTM(bidirectional=True) + Linear
# ---------------------------------------------------------------------------
def bidirectional_lstm_ref(x, params):
    T, B, nIn = x.shape
    H = params["whh_f"].shape[0]

    def make_cell(wih, whh, bias):
        def cell(carry, x_t):
            h, c = carry
            gates = x_t @ wih + h @ whh + bias
            i, f, g, o = jnp.split(gates, 4, axis=-1)
            i, f, o = jax.nn.sigmoid(i), jax.nn.sigmoid(f), jax.nn.sigmoid(o)
            g = jnp.tanh(g)
            c = f * c + i * g
            h = o * jnp.tanh(c)
            return (h, c), h
        return cell

    init = (jnp.zeros((B, H), jnp.float32), jnp.zeros((B, H), jnp.float32))
    _, hf = jax.lax.scan(make_cell(params["wih_f"], params["whh_f"],
                                   params["bias_f"][0]), init, x)
    _, hb = jax.lax.scan(make_cell(params["wih_b"], params["whh_b"],
                                   params["bias_b"][0]), init, x[::-1])
    hb = hb[::-1]
    rec = jnp.concatenate([hf, hb], axis=-1).reshape(T * B, 2 * H)
    w = jnp.concatenate([params["w_emb_f"], params["w_emb_b"]], axis=0)
    out = rec @ w + params["b_emb"][0]
    return out.reshape(T, B, -1)


if __name__ == "__main__":
    # Shapes implied by the module: features (T, B, nIn); nHidden=H; out nOut.
    T, B, nIn, H, nOut = 8, 2, 32, 32, 16

    key = jax.random.PRNGKey(0)
    keys = jax.random.split(key, 12)
    bound = 1.0 / np.sqrt(H)

    def u(k_, shape):
        return jax.random.uniform(k_, shape, jnp.float32, -bound, bound)

    # Weights stored pre-transposed: x @ W_ih^T -> W of shape (nIn, 4H).
    # PyTorch's two biases (b_ih + b_hh) are folded into one (1, 4H) bias.
    params = {
        "wih_f": u(keys[0], (nIn, 4 * H)),
        "whh_f": u(keys[1], (H, 4 * H)),
        "bias_f": u(keys[2], (1, 4 * H)) + u(keys[3], (1, 4 * H)),
        "wih_b": u(keys[4], (nIn, 4 * H)),
        "whh_b": u(keys[5], (H, 4 * H)),
        "bias_b": u(keys[6], (1, 4 * H)) + u(keys[7], (1, 4 * H)),
        # embedding Linear(2H, nOut): transposed weight split into fwd/bwd halves
        "w_emb_f": u(keys[8], (H, nOut)),
        "w_emb_b": u(keys[9], (H, nOut)),
        "b_emb": u(keys[10], (1, nOut)),
    }

    x = jax.random.normal(keys[11], (T, B, nIn), jnp.float32)

    out = bidirectional_lstm_pallas(x, params)
    out = jax.block_until_ready(out)

    ref = bidirectional_lstm_ref(x, params)
    assert out.shape == (T, B, nOut), out.shape
    np.testing.assert_allclose(np.asarray(out), np.asarray(ref),
                               atol=1e-4, rtol=1e-4)
    print("KERNEL_OK")
</pallas_src>

<mosaic_0001>
module attributes {stable_mosaic.version = 11 : i64} {
  func.func @_bilstm_fused_kernel(%arg0: memref<16x64xf32, #tpu.memory_space<vmem>>, %arg1: memref<64x256xf32, #tpu.memory_space<vmem>>, %arg2: memref<1x256xf32, #tpu.memory_space<vmem>>, %arg3: memref<64x256xf32, #tpu.memory_space<vmem>>, %arg4: memref<64x16xf32, #tpu.memory_space<vmem>>, %arg5: memref<1x16xf32, #tpu.memory_space<vmem>>, %arg6: memref<16x16xf32, #tpu.memory_space<vmem>>, %arg7: memref<16x64xf32, #tpu.memory_space<vmem>>) attributes {dimension_semantics = [], scalar_prefetch = 0 : i64, scratch_operands = 1 : i64, tpu.core_type = #tpu.core_type<tc>} {
    %c0 = arith.constant 0 : index
    %c0_0 = arith.constant 0 : index
    %0 = vector.load %arg0[%c0, %c0_0] : memref<16x64xf32, #tpu.memory_space<vmem>>, vector<16x64xf32>
    %c0_1 = arith.constant 0 : index
    %c0_2 = arith.constant 0 : index
    %1 = vector.load %arg1[%c0_1, %c0_2] : memref<64x256xf32, #tpu.memory_space<vmem>>, vector<64x256xf32>
    %cst = arith.constant dense<0.000000e+00> : vector<16x256xf32>
    %2 = tpu.matmul %0, %1, %cst {dimension_numbers = #tpu.dot_dimension_numbers<[1], [0], [0], [1], [0, 0, 1, 1], [], []>} : vector<16x64xf32>, vector<64x256xf32>, vector<16x256xf32> -> vector<16x256xf32>
    %c0_3 = arith.constant 0 : index
    %c0_4 = arith.constant 0 : index
    %3 = vector.load %arg2[%c0_3, %c0_4] : memref<1x256xf32, #tpu.memory_space<vmem>>, vector<1x256xf32>
    %4 = vector.broadcast %3 : vector<1x256xf32> to vector<16x256xf32>
    %5 = arith.addf %2, %4 : vector<16x256xf32>
    %6 = tpu.iota {dimensions = array<i32: 1>} : vector<2x256xi32>
    %c128_i32 = arith.constant 128 : i32
    %7 = vector.broadcast %c128_i32 : i32 to vector<2x256xi32>
    %8 = arith.cmpi sge, %6, %7 : vector<2x256xi32>
    %c192_i32 = arith.constant 192 : i32
    %9 = vector.broadcast %c192_i32 : i32 to vector<2x256xi32>
    %10 = arith.cmpi slt, %6, %9 : vector<2x256xi32>
    %11 = arith.andi %8, %10 : vector<2x256xi1>
    %c0_5 = arith.constant 0 : index
    %c0_6 = arith.constant 0 : index
    %12 = vector.load %arg3[%c0_5, %c0_6] : memref<64x256xf32, #tpu.memory_space<vmem>>, vector<64x256xf32>
    %cst_7 = arith.constant 0.000000e+00 : f32
    %13 = vector.broadcast %cst_7 : f32 to vector<2x64xf32>
    %cst_8 = arith.constant 0.000000e+00 : f32
    %14 = vector.broadcast %cst_8 : f32 to vector<2x64xf32>
    %15 = vector.extract_strided_slice %5 {offsets = [0, 0], sizes = [2, 256], strides = [1, 1]} : vector<16x256xf32> to vector<2x256xf32>
    %cst_9 = arith.constant dense<0.000000e+00> : vector<2x256xf32>
    %16 = tpu.matmul %13, %12, %cst_9 {dimension_numbers = #tpu.dot_dimension_numbers<[1], [0], [0], [1], [0, 0, 1, 1], [], []>} : vector<2x64xf32>, vector<64x256xf32>, vector<2x256xf32> -> vector<2x256xf32>
    %17 = arith.addf %15, %16 : vector<2x256xf32>
    %18 = math.tanh %17 : vector<2x256xf32>
    %19 = arith.negf %17 : vector<2x256xf32>
    %20 = math.exp %19 : vector<2x256xf32>
    %cst_10 = arith.constant 1.000000e+00 : f32
    %21 = vector.broadcast %cst_10 : f32 to vector<2x256xf32>
    %22 = arith.addf %21, %20 : vector<2x256xf32>
    %23 = arith.divf %21, %22 : vector<2x256xf32>
    %24 = arith.select %11, %18, %23 : vector<2x256xi1>, vector<2x256xf32>
    %25 = vector.extract_strided_slice %24 {offsets = [0, 0], sizes = [2, 64], strides = [1, 1]} : vector<2x256xf32> to vector<2x64xf32>
    %26 = vector.extract_strided_slice %24 {offsets = [0, 64], sizes = [2, 64], strides = [1, 1]} : vector<2x256xf32> to vector<2x64xf32>
    %27 = vector.extract_strided_slice %24 {offsets = [0, 128], sizes = [2, 64], strides = [1, 1]} : vector<2x256xf32> to vector<2x64xf32>
    %28 = vector.extract_strided_slice %24 {offsets = [0, 192], sizes = [2, 64], strides = [1, 1]} : vector<2x256xf32> to vector<2x64xf32>
    %29 = arith.mulf %26, %14 : vector<2x64xf32>
    %30 = arith.mulf %25, %27 : vector<2x64xf32>
    %31 = arith.addf %29, %30 : vector<2x64xf32>
    %32 = math.tanh %31 : vector<2x64xf32>
    %33 = arith.mulf %28, %32 : vector<2x64xf32>
    %34 = vector.extract_strided_slice %33 {offsets = [0, 0], sizes = [2, 32], strides = [1, 1]} : vector<2x64xf32> to vector<2x32xf32>
    %c0_11 = arith.constant 0 : index
    %c0_12 = arith.constant 0 : index
    %35 = vector.load %arg7[%c0_11, %c0_12] : memref<16x64xf32, #tpu.memory_space<vmem>>, vector<2x32xf32>
    tpu.vector_store %arg7[%c0_11, %c0_12], %34 {strides = array<i32>} : memref<16x64xf32, #tpu.memory_space<vmem>>, vector<2x32xf32>,
    %36 = vector.extract_strided_slice %33 {offsets = [0, 32], sizes = [2, 32], strides = [1, 1]} : vector<2x64xf32> to vector<2x32xf32>
    %c14 = arith.constant 14 : index
    %c32 = arith.constant 32 : index
    %37 = vector.load %arg7[%c14, %c32] : memref<16x64xf32, #tpu.memory_space<vmem>>, vector<2x32xf32>
    tpu.vector_store %arg7[%c14, %c32], %36 {strides = array<i32>} : memref<16x64xf32, #tpu.memory_space<vmem>>, vector<2x32xf32>,
    %38 = vector.extract_strided_slice %5 {offsets = [2, 0], sizes = [2, 256], strides = [1, 1]} : vector<16x256xf32> to vector<2x256xf32>
    %cst_13 = arith.constant dense<0.000000e+00> : vector<2x256xf32>
    %39 = tpu.matmul %33, %12, %cst_13 {dimension_numbers = #tpu.dot_dimension_numbers<[1], [0], [0], [1], [0, 0, 1, 1], [], []>} : vector<2x64xf32>, vector<64x256xf32>, vector<2x256xf32> -> vector<2x256xf32>
    %40 = arith.addf %38, %39 : vector<2x256xf32>
    %41 = math.tanh %40 : vector<2x256xf32>
    %42 = arith.negf %40 : vector<2x256xf32>
    %43 = math.exp %42 : vector<2x256xf32>
    %cst_14 = arith.constant 1.000000e+00 : f32
    %44 = vector.broadcast %cst_14 : f32 to vector<2x256xf32>
    %45 = arith.addf %44, %43 : vector<2x256xf32>
    %46 = arith.divf %44, %45 : vector<2x256xf32>
    %47 = arith.select %11, %41, %46 : vector<2x256xi1>, vector<2x256xf32>
    %48 = vector.extract_strided_slice %47 {offsets = [0, 0], sizes = [2, 64], strides = [1, 1]} : vector<2x256xf32> to vector<2x64xf32>
    %49 = vector.extract_strided_slice %47 {offsets = [0, 64], sizes = [2, 64], strides = [1, 1]} : vector<2x256xf32> to vector<2x64xf32>
    %50 = vector.extract_strided_slice %47 {offsets = [0, 128], sizes = [2, 64], strides = [1, 1]} : vector<2x256xf32> to vector<2x64xf32>
    %51 = vector.extract_strided_slice %47 {offsets = [0, 192], sizes = [2, 64], strides = [1, 1]} : vector<2x256xf32> to vector<2x64xf32>
    %52 = arith.mulf %49, %31 : vector<2x64xf32>
    %53 = arith.mulf %48, %50 : vector<2x64xf32>
    %54 = arith.addf %52, %53 : vector<2x64xf32>
    %55 = math.tanh %54 : vector<2x64xf32>
    %56 = arith.mulf %51, %55 : vector<2x64xf32>
    %57 = vector.extract_strided_slice %56 {offsets = [0, 0], sizes = [2, 32], strides = [1, 1]} : vector<2x64xf32> to vector<2x32xf32>
    %c2 = arith.constant 2 : index
    %c0_15 = arith.constant 0 : index
    %58 = vector.load %arg7[%c2, %c0_15] : memref<16x64xf32, #tpu.memory_space<vmem>>, vector<2x32xf32>
    tpu.vector_store %arg7[%c2, %c0_15], %57 {strides = array<i32>} : memref<16x64xf32, #tpu.memory_space<vmem>>, vector<2x32xf32>,
    %59 = vector.extract_strided_slice %56 {offsets = [0, 32], sizes = [2, 32], strides = [1, 1]} : vector<2x64xf32> to vector<2x32xf32>
    %c12 = arith.constant 12 : index
    %c32_16 = arith.constant 32 : index
    %60 = vector.load %arg7[%c12, %c32_16] : memref<16x64xf32, #tpu.memory_space<vmem>>, vector<2x32xf32>
    tpu.vector_store %arg7[%c12, %c32_16], %59 {strides = array<i32>} : memref<16x64xf32, #tpu.memory_space<vmem>>, vector<2x32xf32>,
    %61 = vector.extract_strided_slice %5 {offsets = [4, 0], sizes = [2, 256], strides = [1, 1]} : vector<16x256xf32> to vector<2x256xf32>
    %cst_17 = arith.constant dense<0.000000e+00> : vector<2x256xf32>
    %62 = tpu.matmul %56, %12, %cst_17 {dimension_numbers = #tpu.dot_dimension_numbers<[1], [0], [0], [1], [0, 0, 1, 1], [], []>} : vector<2x64xf32>, vector<64x256xf32>, vector<2x256xf32> -> vector<2x256xf32>
    %63 = arith.addf %61, %62 : vector<2x256xf32>
    %64 = math.tanh %63 : vector<2x256xf32>
    %65 = arith.negf %63 : vector<2x256xf32>
    %66 = math.exp %65 : vector<2x256xf32>
    %cst_18 = arith.constant 1.000000e+00 : f32
    %67 = vector.broadcast %cst_18 : f32 to vector<2x256xf32>
    %68 = arith.addf %67, %66 : vector<2x256xf32>
    %69 = arith.divf %67, %68 : vector<2x256xf32>
    %70 = arith.select %11, %64, %69 : vector<2x256xi1>, vector<2x256xf32>
    %71 = vector.extract_strided_slice %70 {offsets = [0, 0], sizes = [2, 64], strides = [1, 1]} : vector<2x256xf32> to vector<2x64xf32>
    %72 = vector.extract_strided_slice %70 {offsets = [0, 64], sizes = [2, 64], strides = [1, 1]} : vector<2x256xf32> to vector<2x64xf32>
    %73 = vector.extract_strided_slice %70 {offsets = [0, 128], sizes = [2, 64], strides = [1, 1]} : vector<2x256xf32> to vector<2x64xf32>
    %74 = vector.extract_strided_slice %70 {offsets = [0, 192], sizes = [2, 64], strides = [1, 1]} : vector<2x256xf32> to vector<2x64xf32>
    %75 = arith.mulf %72, %54 : vector<2x64xf32>
    %76 = arith.mulf %71, %73 : vector<2x64xf32>
    %77 = arith.addf %75, %76 : vector<2x64xf32>
    %78 = math.tanh %77 : vector<2x64xf32>
    %79 = arith.mulf %74, %78 : vector<2x64xf32>
    %80 = vector.extract_strided_slice %79 {offsets = [0, 0], sizes = [2, 32], strides = [1, 1]} : vector<2x64xf32> to vector<2x32xf32>
    %c4 = arith.constant 4 : index
    %c0_19 = arith.constant 0 : index
    %81 = vector.load %arg7[%c4, %c0_19] : memref<16x64xf32, #tpu.memory_space<vmem>>, vector<2x32xf32>
    tpu.vector_store %arg7[%c4, %c0_19], %80 {strides = array<i32>} : memref<16x64xf32, #tpu.memory_space<vmem>>, vector<2x32xf32>,
    %82 = vector.extract_strided_slice %79 {offsets = [0, 32], sizes = [2, 32], strides = [1, 1]} : vector<2x64xf32> to vector<2x32xf32>
    %c10 = arith.constant 10 : index
    %c32_20 = arith.constant 32 : index
    %83 = vector.load %arg7[%c10, %c32_20] : memref<16x64xf32, #tpu.memory_space<vmem>>, vector<2x32xf32>
    tpu.vector_store %arg7[%c10, %c32_20], %82 {strides = array<i32>} : memref<16x64xf32, #tpu.memory_space<vmem>>, vector<2x32xf32>,
    %84 = vector.extract_strided_slice %5 {offsets = [6, 0], sizes = [2, 256], strides = [1, 1]} : vector<16x256xf32> to vector<2x256xf32>
    %cst_21 = arith.constant dense<0.000000e+00> : vector<2x256xf32>
    %85 = tpu.matmul %79, %12, %cst_21 {dimension_numbers = #tpu.dot_dimension_numbers<[1], [0], [0], [1], [0, 0, 1, 1], [], []>} : vector<2x64xf32>, vector<64x256xf32>, vector<2x256xf32> -> vector<2x256xf32>
    %86 = arith.addf %84, %85 : vector<2x256xf32>
    %87 = math.tanh %86 : vector<2x256xf32>
    %88 = arith.negf %86 : vector<2x256xf32>
    %89 = math.exp %88 : vector<2x256xf32>
    %cst_22 = arith.constant 1.000000e+00 : f32
    %90 = vector.broadcast %cst_22 : f32 to vector<2x256xf32>
    %91 = arith.addf %90, %89 : vector<2x256xf32>
    %92 = arith.divf %90, %91 : vector<2x256xf32>
    %93 = arith.select %11, %87, %92 : vector<2x256xi1>, vector<2x256xf32>
    %94 = vector.extract_strided_slice %93 {offsets = [0, 0], sizes = [2, 64], strides = [1, 1]} : vector<2x256xf32> to vector<2x64xf32>
    %95 = vector.extract_strided_slice %93 {offsets = [0, 64], sizes = [2, 64], strides = [1, 1]} : vector<2x256xf32> to vector<2x64xf32>
    %96 = vector.extract_strided_slice %93 {offsets = [0, 128], sizes = [2, 64], strides = [1, 1]} : vector<2x256xf32> to vector<2x64xf32>
    %97 = vector.extract_strided_slice %93 {offsets = [0, 192], sizes = [2, 64], strides = [1, 1]} : vector<2x256xf32> to vector<2x64xf32>
    %98 = arith.mulf %95, %77 : vector<2x64xf32>
    %99 = arith.mulf %94, %96 : vector<2x64xf32>
    %100 = arith.addf %98, %99 : vector<2x64xf32>
    %101 = math.tanh %100 : vector<2x64xf32>
    %102 = arith.mulf %97, %101 : vector<2x64xf32>
    %103 = vector.extract_strided_slice %102 {offsets = [0, 0], sizes = [2, 32], strides = [1, 1]} : vector<2x64xf32> to vector<2x32xf32>
    %c6 = arith.constant 6 : index
    %c0_23 = arith.constant 0 : index
    %104 = vector.load %arg7[%c6, %c0_23] : memref<16x64xf32, #tpu.memory_space<vmem>>, vector<2x32xf32>
    tpu.vector_store %arg7[%c6, %c0_23], %103 {strides = array<i32>} : memref<16x64xf32, #tpu.memory_space<vmem>>, vector<2x32xf32>,
    %105 = vector.extract_strided_slice %102 {offsets = [0, 32], sizes = [2, 32], strides = [1, 1]} : vector<2x64xf32> to vector<2x32xf32>
    %c8 = arith.constant 8 : index
    %c32_24 = arith.constant 32 : index
    %106 = vector.load %arg7[%c8, %c32_24] : memref<16x64xf32, #tpu.memory_space<vmem>>, vector<2x32xf32>
    tpu.vector_store %arg7[%c8, %c32_24], %105 {strides = array<i32>} : memref<16x64xf32, #tpu.memory_space<vmem>>, vector<2x32xf32>,
    %107 = vector.extract_strided_slice %5 {offsets = [8, 0], sizes = [2, 256], strides = [1, 1]} : vector<16x256xf32> to vector<2x256xf32>
    %cst_25 = arith.constant dense<0.000000e+00> : vector<2x256xf32>
    %108 = tpu.matmul %102, %12, %cst_25 {dimension_numbers = #tpu.dot_dimension_numbers<[1], [0], [0], [1], [0, 0, 1, 1], [], []>} : vector<2x64xf32>, vector<64x256xf32>, vector<2x256xf32> -> vector<2x256xf32>
    %109 = arith.addf %107, %108 : vector<2x256xf32>
    %110 = math.tanh %109 : vector<2x256xf32>
    %111 = arith.negf %109 : vector<2x256xf32>
    %112 = math.exp %111 : vector<2x256xf32>
    %cst_26 = arith.constant 1.000000e+00 : f32
    %113 = vector.broadcast %cst_26 : f32 to vector<2x256xf32>
    %114 = arith.addf %113, %112 : vector<2x256xf32>
    %115 = arith.divf %113, %114 : vector<2x256xf32>
    %116 = arith.select %11, %110, %115 : vector<2x256xi1>, vector<2x256xf32>
    %117 = vector.extract_strided_slice %116 {offsets = [0, 0], sizes = [2, 64], strides = [1, 1]} : vector<2x256xf32> to vector<2x64xf32>
    %118 = vector.extract_strided_slice %116 {offsets = [0, 64], sizes = [2, 64], strides = [1, 1]} : vector<2x256xf32> to vector<2x64xf32>
    %119 = vector.extract_strided_slice %116 {offsets = [0, 128], sizes = [2, 64], strides = [1, 1]} : vector<2x256xf32> to vector<2x64xf32>
    %120 = vector.extract_strided_slice %116 {offsets = [0, 192], sizes = [2, 64], strides = [1, 1]} : vector<2x256xf32> to vector<2x64xf32>
    %121 = arith.mulf %118, %100 : vector<2x64xf32>
    %122 = arith.mulf %117, %119 : vector<2x64xf32>
    %123 = arith.addf %121, %122 : vector<2x64xf32>
    %124 = math.tanh %123 : vector<2x64xf32>
    %125 = arith.mulf %120, %124 : vector<2x64xf32>
    %126 = vector.extract_strided_slice %125 {offsets = [0, 0], sizes = [2, 32], strides = [1, 1]} : vector<2x64xf32> to vector<2x32xf32>
    %c8_27 = arith.constant 8 : index
    %c0_28 = arith.constant 0 : index
    %127 = vector.load %arg7[%c8_27, %c0_28] : memref<16x64xf32, #tpu.memory_space<vmem>>, vector<2x32xf32>
    tpu.vector_store %arg7[%c8_27, %c0_28], %126 {strides = array<i32>} : memref<16x64xf32, #tpu.memory_space<vmem>>, vector<2x32xf32>,
    %128 = vector.extract_strided_slice %125 {offsets = [0, 32], sizes = [2, 32], strides = [1, 1]} : vector<2x64xf32> to vector<2x32xf32>
    %c6_29 = arith.constant 6 : index
    %c32_30 = arith.constant 32 : index
    %129 = vector.load %arg7[%c6_29, %c32_30] : memref<16x64xf32, #tpu.memory_space<vmem>>, vector<2x32xf32>
    tpu.vector_store %arg7[%c6_29, %c32_30], %128 {strides = array<i32>} : memref<16x64xf32, #tpu.memory_space<vmem>>, vector<2x32xf32>,
    %130 = vector.extract_strided_slice %5 {offsets = [10, 0], sizes = [2, 256], strides = [1, 1]} : vector<16x256xf32> to vector<2x256xf32>
    %cst_31 = arith.constant dense<0.000000e+00> : vector<2x256xf32>
    %131 = tpu.matmul %125, %12, %cst_31 {dimension_numbers = #tpu.dot_dimension_numbers<[1], [0], [0], [1], [0, 0, 1, 1], [], []>} : vector<2x64xf32>, vector<64x256xf32>, vector<2x256xf32> -> vector<2x256xf32>
    %132 = arith.addf %130, %131 : vector<2x256xf32>
    %133 = math.tanh %132 : vector<2x256xf32>
    %134 = arith.negf %132 : vector<2x256xf32>
    %135 = math.exp %134 : vector<2x256xf32>
    %cst_32 = arith.constant 1.000000e+00 : f32
    %136 = vector.broadcast %cst_32 : f32 to vector<2x256xf32>
    %137 = arith.addf %136, %135 : vector<2x256xf32>
    %138 = arith.divf %136, %137 : vector<2x256xf32>
    %139 = arith.select %11, %133, %138 : vector<2x256xi1>, vector<2x256xf32>
    %140 = vector.extract_strided_slice %139 {offsets = [0, 0], sizes = [2, 64], strides = [1, 1]} : vector<2x256xf32> to vector<2x64xf32>
    %141 = vector.extract_strided_slice %139 {offsets = [0, 64], sizes = [2, 64], strides = [1, 1]} : vector<2x256xf32> to vector<2x64xf32>
    %142 = vector.extract_strided_slice %139 {offsets = [0, 128], sizes = [2, 64], strides = [1, 1]} : vector<2x256xf32> to vector<2x64xf32>
    %143 = vector.extract_strided_slice %139 {offsets = [0, 192], sizes = [2, 64], strides = [1, 1]} : vector<2x256xf32> to vector<2x64xf32>
    %144 = arith.mulf %141, %123 : vector<2x64xf32>
    %145 = arith.mulf %140, %142 : vector<2x64xf32>
    %146 = arith.addf %144, %145 : vector<2x64xf32>
    %147 = math.tanh %146 : vector<2x64xf32>
    %148 = arith.mulf %143, %147 : vector<2x64xf32>
    %149 = vector.extract_strided_slice %148 {offsets = [0, 0], sizes = [2, 32], strides = [1, 1]} : vector<2x64xf32> to vector<2x32xf32>
    %c10_33 = arith.constant 10 : index
    %c0_34 = arith.constant 0 : index
    %150 = vector.load %arg7[%c10_33, %c0_34] : memref<16x64xf32, #tpu.memory_space<vmem>>, vector<2x32xf32>
    tpu.vector_store %arg7[%c10_33, %c0_34], %149 {strides = array<i32>} : memref<16x64xf32, #tpu.memory_space<vmem>>, vector<2x32xf32>,
    %151 = vector.extract_strided_slice %148 {offsets = [0, 32], sizes = [2, 32], strides = [1, 1]} : vector<2x64xf32> to vector<2x32xf32>
    %c4_35 = arith.constant 4 : index
    %c32_36 = arith.constant 32 : index
    %152 = vector.load %arg7[%c4_35, %c32_36] : memref<16x64xf32, #tpu.memory_space<vmem>>, vector<2x32xf32>
    tpu.vector_store %arg7[%c4_35, %c32_36], %151 {strides = array<i32>} : memref<16x64xf32, #tpu.memory_space<vmem>>, vector<2x32xf32>,
    %153 = vector.extract_strided_slice %5 {offsets = [12, 0], sizes = [2, 256], strides = [1, 1]} : vector<16x256xf32> to vector<2x256xf32>
    %cst_37 = arith.constant dense<0.000000e+00> : vector<2x256xf32>
    %154 = tpu.matmul %148, %12, %cst_37 {dimension_numbers = #tpu.dot_dimension_numbers<[1], [0], [0], [1], [0, 0, 1, 1], [], []>} : vector<2x64xf32>, vector<64x256xf32>, vector<2x256xf32> -> vector<2x256xf32>
    %155 = arith.addf %153, %154 : vector<2x256xf32>
    %156 = math.tanh %155 : vector<2x256xf32>
    %157 = arith.negf %155 : vector<2x256xf32>
    %158 = math.exp %157 : vector<2x256xf32>
    %cst_38 = arith.constant 1.000000e+00 : f32
    %159 = vector.broadcast %cst_38 : f32 to vector<2x256xf32>
    %160 = arith.addf %159, %158 : vector<2x256xf32>
    %161 = arith.divf %159, %160 : vector<2x256xf32>
    %162 = arith.select %11, %156, %161 : vector<2x256xi1>, vector<2x256xf32>
    %163 = vector.extract_strided_slice %162 {offsets = [0, 0], sizes = [2, 64], strides = [1, 1]} : vector<2x256xf32> to vector<2x64xf32>
    %164 = vector.extract_strided_slice %162 {offsets = [0, 64], sizes = [2, 64], strides = [1, 1]} : vector<2x256xf32> to vector<2x64xf32>
    %165 = vector.extract_strided_slice %162 {offsets = [0, 128], sizes = [2, 64], strides = [1, 1]} : vector<2x256xf32> to vector<2x64xf32>
    %166 = vector.extract_strided_slice %162 {offsets = [0, 192], sizes = [2, 64], strides = [1, 1]} : vector<2x256xf32> to vector<2x64xf32>
    %167 = arith.mulf %164, %146 : vector<2x64xf32>
    %168 = arith.mulf %163, %165 : vector<2x64xf32>
    %169 = arith.addf %167, %168 : vector<2x64xf32>
    %170 = math.tanh %169 : vector<2x64xf32>
    %171 = arith.mulf %166, %170 : vector<2x64xf32>
    %172 = vector.extract_strided_slice %171 {offsets = [0, 0], sizes = [2, 32], strides = [1, 1]} : vector<2x64xf32> to vector<2x32xf32>
    %c12_39 = arith.constant 12 : index
    %c0_40 = arith.constant 0 : index
    %173 = vector.load %arg7[%c12_39, %c0_40] : memref<16x64xf32, #tpu.memory_space<vmem>>, vector<2x32xf32>
    tpu.vector_store %arg7[%c12_39, %c0_40], %172 {strides = array<i32>} : memref<16x64xf32, #tpu.memory_space<vmem>>, vector<2x32xf32>,
    %174 = vector.extract_strided_slice %171 {offsets = [0, 32], sizes = [2, 32], strides = [1, 1]} : vector<2x64xf32> to vector<2x32xf32>
    %c2_41 = arith.constant 2 : index
    %c32_42 = arith.constant 32 : index
    %175 = vector.load %arg7[%c2_41, %c32_42] : memref<16x64xf32, #tpu.memory_space<vmem>>, vector<2x32xf32>
    tpu.vector_store %arg7[%c2_41, %c32_42], %174 {strides = array<i32>} : memref<16x64xf32, #tpu.memory_space<vmem>>, vector<2x32xf32>,
    %176 = vector.extract_strided_slice %5 {offsets = [14, 0], sizes = [2, 256], strides = [1, 1]} : vector<16x256xf32> to vector<2x256xf32>
    %cst_43 = arith.constant dense<0.000000e+00> : vector<2x256xf32>
    %177 = tpu.matmul %171, %12, %cst_43 {dimension_numbers = #tpu.dot_dimension_numbers<[1], [0], [0], [1], [0, 0, 1, 1], [], []>} : vector<2x64xf32>, vector<64x256xf32>, vector<2x256xf32> -> vector<2x256xf32>
    %178 = arith.addf %176, %177 : vector<2x256xf32>
    %179 = math.tanh %178 : vector<2x256xf32>
    %180 = arith.negf %178 : vector<2x256xf32>
    %181 = math.exp %180 : vector<2x256xf32>
    %cst_44 = arith.constant 1.000000e+00 : f32
    %182 = vector.broadcast %cst_44 : f32 to vector<2x256xf32>
    %183 = arith.addf %182, %181 : vector<2x256xf32>
    %184 = arith.divf %182, %183 : vector<2x256xf32>
    %185 = arith.select %11, %179, %184 : vector<2x256xi1>, vector<2x256xf32>
    %186 = vector.extract_strided_slice %185 {offsets = [0, 0], sizes = [2, 64], strides = [1, 1]} : vector<2x256xf32> to vector<2x64xf32>
    %187 = vector.extract_strided_slice %185 {offsets = [0, 64], sizes = [2, 64], strides = [1, 1]} : vector<2x256xf32> to vector<2x64xf32>
    %188 = vector.extract_strided_slice %185 {offsets = [0, 128], sizes = [2, 64], strides = [1, 1]} : vector<2x256xf32> to vector<2x64xf32>
    %189 = vector.extract_strided_slice %185 {offsets = [0, 192], sizes = [2, 64], strides = [1, 1]} : vector<2x256xf32> to vector<2x64xf32>
    %190 = arith.mulf %187, %169 : vector<2x64xf32>
    %191 = arith.mulf %186, %188 : vector<2x64xf32>
    %192 = arith.addf %190, %191 : vector<2x64xf32>
    %193 = math.tanh %192 : vector<2x64xf32>
    %194 = arith.mulf %189, %193 : vector<2x64xf32>
    %195 = vector.extract_strided_slice %194 {offsets = [0, 0], sizes = [2, 32], strides = [1, 1]} : vector<2x64xf32> to vector<2x32xf32>
    %c14_45 = arith.constant 14 : index
    %c0_46 = arith.constant 0 : index
    %196 = vector.load %arg7[%c14_45, %c0_46] : memref<16x64xf32, #tpu.memory_space<vmem>>, vector<2x32xf32>
    tpu.vector_store %arg7[%c14_45, %c0_46], %195 {strides = array<i32>} : memref<16x64xf32, #tpu.memory_space<vmem>>, vector<2x32xf32>,
    %197 = vector.extract_strided_slice %194 {offsets = [0, 32], sizes = [2, 32], strides = [1, 1]} : vector<2x64xf32> to vector<2x32xf32>
    %c0_47 = arith.constant 0 : index
    %c32_48 = arith.constant 32 : index
    %198 = vector.load %arg7[%c0_47, %c32_48] : memref<16x64xf32, #tpu.memory_space<vmem>>, vector<2x32xf32>
    tpu.vector_store %arg7[%c0_47, %c32_48], %197 {strides = array<i32>} : memref<16x64xf32, #tpu.memory_space<vmem>>, vector<2x32xf32>,
    %c0_49 = arith.constant 0 : index
    %c0_50 = arith.constant 0 : index
    %199 = vector.load %arg7[%c0_49, %c0_50] : memref<16x64xf32, #tpu.memory_space<vmem>>, vector<16x64xf32>
    %c0_51 = arith.constant 0 : index
    %c0_52 = arith.constant 0 : index
    %200 = vector.load %arg4[%c0_51, %c0_52] : memref<64x16xf32, #tpu.memory_space<vmem>>, vector<64x16xf32>
    %cst_53 = arith.constant dense<0.000000e+00> : vector<16x16xf32>
    %201 = tpu.matmul %199, %200, %cst_53 {dimension_numbers = #tpu.dot_dimension_numbers<[1], [0], [0], [1], [0, 0, 1, 1], [], []>} : vector<16x64xf32>, vector<64x16xf32>, vector<16x16xf32> -> vector<16x16xf32>
    %c0_54 = arith.constant 0 : index
    %c0_55 = arith.constant 0 : index
    %202 = vector.load %arg5[%c0_54, %c0_55] : memref<1x16xf32, #tpu.memory_space<vmem>>, vector<1x16xf32>
    %203 = vector.broadcast %202 : vector<1x16xf32> to vector<16x16xf32>
    %204 = arith.addf %201, %203 : vector<16x16xf32>
    %c0_56 = arith.constant 0 : index
    %c0_57 = arith.constant 0 : index
    %205 = vector.load %arg6[%c0_56, %c0_57] : memref<16x16xf32, #tpu.memory_space<vmem>>, vector<16x16xf32>
    tpu.vector_store %arg6[%c0_56, %c0_57], %204 {strides = array<i32>} : memref<16x16xf32, #tpu.memory_space<vmem>>, vector<16x16xf32>,
    return
  }
}

</mosaic_0001>

<bundles_post_ra>
// kernel: tpu_custom_call.1
= control target key start
LH: loop header
LB: loop body
LE: loop exit
PB: predicated region body
PF: predicated region fallthrough
CT: control target
= control target key end

     0   :  { %11 = vsyncpa [#allocation4], 0  ;;  %s1853_s0 = inlined_call_operand.vmem [shape: f32[16,64], index: 0, kind: input, shape index: {}]   ;;  %s1854_s1 = inlined_call_operand.hbm [shape: f32[64,256], index: 1, kind: input, shape index: {}]   ;;  %s1855_s2 = inlined_call_operand.vmem [shape: f32[1,256], index: 2, kind: input, shape index: {}]   ;;  %s1856_s3 = inlined_call_operand.hbm [shape: f32[64,256], index: 3, kind: input, shape index: {}]   ;;  %s1857_s4 = inlined_call_operand.vmem [shape: f32[64,16], index: 4, kind: input, shape index: {}]   ;;  %s1858_s5 = inlined_call_operand.vmem [shape: f32[1,16], index: 5, kind: input, shape index: {}]   ;;  %s1859_s6 = inlined_call_operand.hbm [shape: f32[16,16], index: 6, kind: output, shape index: {}]  }
   0x1   :  { %12 = vsyncpa [#allocation7], 0 }
   0x2   :  { %13 = vsyncpa [#allocation5], 0  ;;  %s1467_s21 = smov [#allocation3]  }
   0x3   :  { %s21_s22 = sshll.u32 %s1467_s21, 4  ;;  %s22_s22 = int_to_ptr.vmem [resolvable:$true] %s21_s22 }
   0x4   :  { %s1409_s23 = scalar_lea.vmem %s22_s22, 2048  ;;  %p1414_p1 = scmp.lt.s32.totalorder %s22_s22, %s22_s22 }
   0x5   :  { %p1410_p0 = scmp.ne.s32.totalorder %s22_s22, %s1409_s23  ;;  %p1415_p2 = scmp.lt.s32.totalorder %s1409_s23, %s1409_s23 }
   0x7   :  { %p1416_p3 = por %p1415_p2, %p1414_p1 }
   0x9   :  { %p1417_p4 = pnand %p1416_p3, %p1410_p0 }
   0xb   :  { %1420 = shalt.err (!%p1417_p4)
}
   0xc   :  { %s1468_s24 = smov 256   ;;  %s1469_s25 = smov 16  }
   0xd   :  { %27 = dma.hbm_to_vmem [thread:$0]  %s1854_s1, 2048, %s22_s22, [#allocation4], %s1468_s24, %s1468_s24, %s1469_s25  }
   0xe   :  { %s1470_s28 = smov [#allocation6]  }
   0xf   :  { %s35_s29 = sshll.u32 %s1470_s28, 4  ;;  %s36_s29 = int_to_ptr.vmem [resolvable:$true] %s35_s29 }
  0x10   :  { %s1429_s30 = scalar_lea.vmem %s36_s29, 2048  ;;  %p1434_p6 = scmp.lt.s32.totalorder %s36_s29, %s36_s29 }
  0x11   :  { %p1430_p5 = scmp.ne.s32.totalorder %s36_s29, %s1429_s30  ;;  %p1435_p7 = scmp.lt.s32.totalorder %s1429_s30, %s1429_s30 }
  0x13   :  { %p1436_p8 = por %p1435_p7, %p1434_p6 }
  0x15   :  { %p1437_p9 = pnand %p1436_p8, %p1430_p5 }
  0x17   :  { %1440 = shalt.err (!%p1437_p9)
}
  0x18   :  { %41 = dma.hbm_to_vmem [thread:$0]  %s1856_s3, 2048, %s36_s29, [#allocation7], %s1468_s24, %s1468_s24, %s1469_s25  }
  0x19   :  { %1461 = dma.done.wait [#allocation4], 2048  }
  0x1a   :  { %1462 = vsyncadd [#allocation4], 4294965248 }
  0x1b   :  { %1463 = dma.done.wait [#allocation7], 2048  }
  0x1c   :  { %1464 = vsyncadd [#allocation7], 4294965248  ;;  %v1471_v0 = vmov 0.0   ;;  %v69_v1 = vld [vmem:[#allocation3 + $0x78] sm:$0xff]  ;;  %v68_v3 = vld [vmem:[#allocation3 + $0x70] sm:$0xff]  ;;  %vm82_vm0 = vcmask 523264   ;;  %v72_v34 = vlaneseq }
  0x1d   :  { %153 = vmatprep.mubr.f32.mxu0 %v1471_v0  ;;  %258 = vmatprep.mubr.f32.mxu1 %v1471_v0  ;;  %v1519_v2 = vld [vmem:[#allocation6 + $0x78] sm:$0xff]  ;;  %v1522_v4 = vld [vmem:[#allocation6 + $0x70] sm:$0xff]  ;;  %v67_v5 = vld [vmem:[#allocation3 + $0x68] sm:$0xff]  ;;  %vm296_vm2 = vcmask 254976   ;;  %vm298_vm3 = vcmask 517376   ;;  %vm413_vm4 = vcmask 257026  }
  0x1e   :  { %105 = vmatprep.subr.mxu0 %v69_v1  ;;  %210 = vmatprep.subr.mxu1 %v1519_v2  ;;  %v1524_v6 = vld [vmem:[#allocation6 + $0x68] sm:$0xff]  ;;  %v66_v7 = vld [vmem:[#allocation3 + $0x60] sm:$0xff]  ;;  %v65_v9 = vld [vmem:[#allocation3 + $0x58] sm:$0xff]  ;;  %v73_v35 = vshrl.u32 %v72_v34, 7  ;;  %v167_v55 = vand.u32 127, %v72_v34  ;;  %vm415_vm5 = vcmask 519426  }
  0x1f   :  { %106 = vmatpush1.msra.mxu0 %v68_v3  ;;  %211 = vmatpush1.msra.mxu1 %v1522_v4  ;;  %v1527_v8 = vld [vmem:[#allocation6 + $0x60] sm:$0xff]  ;;  %v1530_v10 = vld [vmem:[#allocation6 + $0x58] sm:$0xff]  ;;  %v64_v11 = vld [vmem:[#allocation3 + $0x50] sm:$0xff]  ;;  %vm653_vm6 = vcmask 261126   ;;  %vm655_vm7 = vcmask 523526   ;;  %vm533_vm8 = vcmask 259076  }
  0x20   :  { %107 = vmatprep.subr.mxu0 %v67_v5  ;;  %212 = vmatprep.subr.mxu1 %v1524_v6  ;;  %v1532_v12 = vld [vmem:[#allocation6 + $0x50] sm:$0xff]  ;;  %v63_v13 = vld [vmem:[#allocation3 + $0x48] sm:$0xff]  ;;  %v62_v15 = vld [vmem:[#allocation3 + $0x40] sm:$0xff]  ;;  %v74_v36 = vsub.s32 0, %v73_v35  ;;  %v78_v38 = vsub.s32 1, %v73_v35  ;;  %v1623_v56 = vadd.s32 128, %v167_v55 }
  0x21   :  { %108 = vmatpush1.msra.mxu0 %v66_v7  ;;  %213 = vmatpush1.msra.mxu1 %v1527_v8  ;;  %v1535_v14 = vld [vmem:[#allocation6 + $0x48] sm:$0xff]  ;;  %v1538_v16 = vld [vmem:[#allocation6 + $0x40] sm:$0xff]  ;;  %v61_v17 = vld [vmem:[#allocation3 + $0x38] sm:$0xff]  ;;  %vm535_vm9 = vcmask 521476   ;;  %vm1218_vm10 = vcmask 130048   ;;  %s1473_s29 = smov [#allocation8]  }
  0x22   :  { %109 = vmatprep.subr.mxu0 %v65_v9  ;;  %214 = vmatprep.subr.mxu1 %v1530_v10  ;;  %v1541_v18 = vld [vmem:[#allocation6 + $0x38] sm:$0xff]  ;;  %v60_v19 = vld [vmem:[#allocation3 + $0x30] sm:$0xff]  ;;  %v59_v21 = vld [vmem:[#allocation3 + $0x28] sm:$0xff]  ;;  %vm172_vm1 = vcmp.lt.s32.totalorder %v1623_v56, 192  ;;  %s1226_s30 = sshll.u32 %s1473_s29, 4  ;;  %s1227_s30 = int_to_ptr.vmem [resolvable:$true] %s1226_s30 }
  0x23   :  { %110 = vmatpush1.msra.mxu0 %v64_v11  ;;  %215 = vmatpush1.msra.mxu1 %v1532_v12  ;;  %v1544_v20 = vld [vmem:[#allocation6 + $0x30] sm:$0xff]  ;;  %v1547_v22 = vld [vmem:[#allocation6 + $0x28] sm:$0xff]  ;;  %v58_v23 = vld [vmem:[#allocation3 + $0x20] sm:$0xff]  ;;  %s1441_s7 = scalar_lea.vmem %s1227_s30, 256  ;;  %p1446_p11 = scmp.lt.s32.totalorder %s1227_s30, %s1227_s30 }
  0x24   :  { %111 = vmatprep.subr.mxu0 %v63_v13  ;;  %216 = vmatprep.subr.mxu1 %v1535_v14  ;;  %v1550_v24 = vld [vmem:[#allocation6 + $0x20] sm:$0xff]  ;;  %v57_v25 = vld [vmem:[#allocation3 + $0x18] sm:$0xff]  ;;  %v56_v27 = vld [vmem:[#allocation3 + $0x10] sm:$0xff]  ;;  %p1442_p10 = scmp.ne.s32.totalorder %s1227_s30, %s1441_s7  ;;  %p1447_p12 = scmp.lt.s32.totalorder %s1441_s7, %s1441_s7 }
  0x25   :  { %112 = vmatpush1.msra.mxu0 %v62_v15  ;;  %217 = vmatpush1.msra.mxu1 %v1538_v16  ;;  %v1553_v26 = vld [vmem:[#allocation6 + $0x18] sm:$0xff]  ;;  %v1556_v28 = vld [vmem:[#allocation6 + $0x10] sm:$0xff]  ;;  %v55_v29 = vld [vmem:[#allocation3 + $0x8] sm:$0xff] }
  0x26   :  { %113 = vmatprep.subr.mxu0 %v61_v17  ;;  %218 = vmatprep.subr.mxu1 %v1541_v18  ;;  %v1559_v30 = vld [vmem:[#allocation6 + $0x8] sm:$0xff]  ;;  %v54_v31 = vld [vmem:[#allocation3] sm:$0xff]  ;;  %v52_v33 = vld [vmem:[%s1853_s0] sm:$0xff]  ;;  %p1448_p13 = por %p1447_p12, %p1446_p11 }
  0x27   :  { %114 = vmatpush1.msra.mxu0 %v60_v19  ;;  %219 = vmatpush1.msra.mxu1 %v1544_v20  ;;  %v1562_v32 = vld [vmem:[#allocation6] sm:$0xff]  ;;  %v70_v37 = vld [vmem:[%s1855_s2] sm:$0x3]  ;;  %s1472_s2 = smov 64   ;;  %v53_v62 = vld [vmem:[%s1853_s0 + $0x8] sm:$0xff] }
  0x28   :  { %115 = vmatprep.subr.mxu0 %v59_v21  ;;  %220 = vmatprep.subr.mxu1 %v1547_v22  ;;  %v1611_v39 = vrot.slane %v70_v37, %v74_v36  ;;  %v1613_v40 = vrot.slane %v70_v37, %v78_v38  ;;  %v1127_v56 = vld [vmem:[%s1857_s4 + $0x28] sm:$0xff]  ;;  %p1449_p0 = pnand %p1448_p13, %p1442_p10 }
  0x29   :  { %116 = vmatpush1.msra.mxu0 %v58_v23  ;;  %221 = vmatpush1.msra.mxu1 %v1550_v24 }
  0x2a   :  { %117 = vmatprep.subr.mxu0 %v57_v25  ;;  %222 = vmatprep.subr.mxu1 %v1553_v26 }
  0x2b   :  { %118 = vmatpush1.msra.mxu0 %v56_v27  ;;  %223 = vmatpush1.msra.mxu1 %v1556_v28 }
  0x2c   :  { %119 = vmatprep.subr.mxu0 %v55_v29  ;;  %224 = vmatprep.subr.mxu1 %v1559_v30 }
  0x2d   :  { %120 = vmatpush1.msra.mxu0 %v54_v31  ;;  %225 = vmatpush1.msra.mxu1 %v1562_v32 }
  0x2e   :  { %1239 = vmatmul.mubr.msk.f32.vlgmr.msra.gmra.mxu0 %vm82_vm0, %v52_v33  ;;  %259 = vmatmul.mubr.f32.vlgmr.msra.gmra.mxu1 %v1471_v0 }
  0x2f   :  { %318 = vmatprep.subr.mxu0 %v1519_v2  ;;  %159 = vmatprep.mubr.f32.mxu0 %v1471_v0 }
  0x30   :  { %319 = vmatpush1.msra.mxu0 %v1522_v4  ;;  %438 = vmatprep.subr.mxu1 %v1519_v2 }
  0x31   :  { %320 = vmatprep.subr.mxu0 %v1524_v6  ;;  %439 = vmatpush1.msra.mxu1 %v1522_v4 }
  0x32   :  { %321 = vmatpush1.msra.mxu0 %v1527_v8  ;;  %440 = vmatprep.subr.mxu1 %v1524_v6 }
  0x33   :  { %322 = vmatprep.subr.mxu0 %v1530_v10  ;;  %441 = vmatpush1.msra.mxu1 %v1527_v8 }
  0x34   :  { %323 = vmatpush1.msra.mxu0 %v1532_v12  ;;  %442 = vmatprep.subr.mxu1 %v1530_v10 }
  0x35   :  { %324 = vmatprep.subr.mxu0 %v1535_v14  ;;  %443 = vmatpush1.msra.mxu1 %v1532_v12 }
  0x36   :  { %325 = vmatpush1.msra.mxu0 %v1538_v16  ;;  %444 = vmatprep.subr.mxu1 %v1535_v14 }
  0x37   :  { %326 = vmatprep.subr.mxu0 %v1541_v18  ;;  %445 = vmatpush1.msra.mxu1 %v1538_v16 }
  0x38   :  { %327 = vmatpush1.msra.mxu0 %v1544_v20  ;;  %446 = vmatprep.subr.mxu1 %v1541_v18 }
  0x39   :  { %328 = vmatprep.subr.mxu0 %v1547_v22  ;;  %447 = vmatpush1.msra.mxu1 %v1544_v20 }
  0x3a   :  { %329 = vmatpush1.msra.mxu0 %v1550_v24  ;;  %448 = vmatprep.subr.mxu1 %v1547_v22 }
  0x3b   :  { %330 = vmatprep.subr.mxu0 %v1553_v26  ;;  %449 = vmatpush1.msra.mxu1 %v1550_v24 }
  0x3c   :  { %331 = vmatpush1.msra.mxu0 %v1556_v28  ;;  %450 = vmatprep.subr.mxu1 %v1553_v26 }
  0x3d   :  { %332 = vmatprep.subr.mxu0 %v1559_v30  ;;  %451 = vmatpush1.msra.mxu1 %v1556_v28 }
  0x3e   :  { %333 = vmatpush1.msra.mxu0 %v1562_v32  ;;  %452 = vmatprep.subr.mxu1 %v1559_v30 }
  0x3f   :  { %453 = vmatpush1.msra.mxu1 %v1562_v32  ;;  %486 = vmatprep.mubr.f32.mxu1 %v1471_v0 }
  0x40   :  { %558 = vmatprep.subr.mxu0 %v1519_v2  ;;  %678 = vmatprep.subr.mxu1 %v1519_v2 }
  0x41   :  { %1240 = vmatmul.mubr.msk.f32.gmra.mxu0 %vm82_vm0, %v53_v62 }
  0x42   :  { %366 = vmatprep.mubr.f32.mxu0 %v1471_v0 }
  0xee   :  { %v155_v41 = vpop.f32.mrf.mxu0  ;;  %v260_v42 = vpop.f32.mrf.mxu1 }
  0xef   :  { %v1616_v43 = vadd.f32 %v155_v41, %v1611_v39 }
  0xf0   :  { %v157_v44 = vpop.f32.mrf.mxu0  ;;  %v262_v47 = vpop.f32.mrf.mxu1 }
  0xf1   :  { %v265_v45 = vadd.f32 %v260_v42, %v1616_v43  ;;  %v1620_v46 = vadd.f32 %v157_v44, %v1613_v40 }
  0xf3   :  { %v1241_v48 = vmul.f32 -1.442695, %v265_v45  ;;  %v266_v49 = vadd.f32 %v262_v47, %v1620_v46 }
  0xf5   :  { %1305 = vpow2.f32 %v1241_v48  ;;  %v1242_v50 = vmul.f32 -1.442695, %v266_v49 }
  0xf7   :  { %1307 = vpow2.f32 %v1242_v50 }
  0xf8   :  { %1309 = vtanh.f32 %v266_v49 }
 0x101   :  { %v1655_v11 = vpop.f32.mrf.mxu0 }
 0x102   :  { %v1306_v51 = vpop.eup %1305 }
 0x103   :  { %v275_v53 = vadd.f32 1.0, %v1306_v51  ;;  %v1657_v13 = vpop.f32.mrf.mxu0 }
 0x104   :  { %v1308_v52 = vpop.eup %1307 }
 0x105   :  { %v276_v54 = vadd.f32 1.0, %v1308_v52  ;;  %v1310_v57 = vpop.eup %1309 }
 0x107   :  { %1311 = vrcp.f32 %v276_v54 }
 0x108   :  { %1313 = vrcp.f32 %v275_v53 }
 0x114   :  { %v1312_v58 = vpop.eup %1311 }
 0x115   :  { %v1314_v59 = vpop.eup %1313  ;;  %v282_v60 = vsel %vm172_vm1, %v1310_v57, %v1312_v58 }
 0x116   :  { %v284_v61 = vmul.f32 %v1314_v59, %v282_v60  ;;  %v283_v63 = vmul.f32 0.0, %v1314_v59 }
 0x118   :  { %286 = vrot.lane.b32.xlu0 %v284_v61, %s1472_s2 }
 0x18a   :  { %v287_v1 = vpop.permute.xlu0 %286 }
 0x18b   :  { %v289_v3 = vadd.f32 %v287_v1, %v283_v63 }
 0x18d   :  { %1315 = vtanh.f32 %v289_v3  ;;  %v398_v36 = vrot.slane %v289_v3, 6 }
 0x19a   :  { %v1316_v5 = vpop.eup %1315 }
 0x19b   :  { %v291_v7 = vmul.f32 %v1316_v5, %v282_v60 }
 0x19d   :  { %293 = vrot.lane.b32.xlu0 %v291_v7, %s1472_s2 }
 0x20f   :  { %v294_v9 = vpop.permute.xlu0 %293 }
 0x210   :  { %297 = vst.msk [vmem:[#allocation2] sm:$0x3] %vm296_vm2, %v294_v9  ;;  %1243 = vmatmul.mubr.msk.f32.vlgmr.msra.gmra.mxu0 %vm82_vm0, %v294_v9 }
 0x211   :  { %299 = vst.msk [vmem:[#allocation2 + $0xe] sm:$0x3] %vm298_vm3, %v294_v9  ;;  %559 = vmatpush1.msra.mxu0 %v1522_v4  ;;  %606 = vmatprep.mubr.f32.mxu0 %v1471_v0 }
 0x212   :  { %560 = vmatprep.subr.mxu0 %v1524_v6 }
 0x213   :  { %561 = vmatpush1.msra.mxu0 %v1527_v8 }
 0x214   :  { %562 = vmatprep.subr.mxu0 %v1530_v10 }
 0x215   :  { %563 = vmatpush1.msra.mxu0 %v1532_v12 }
 0x216   :  { %564 = vmatprep.subr.mxu0 %v1535_v14 }
 0x217   :  { %565 = vmatpush1.msra.mxu0 %v1538_v16 }
 0x218   :  { %566 = vmatprep.subr.mxu0 %v1541_v18 }
 0x219   :  { %567 = vmatpush1.msra.mxu0 %v1544_v20 }
 0x21a   :  { %568 = vmatprep.subr.mxu0 %v1547_v22 }
 0x21b   :  { %569 = vmatpush1.msra.mxu0 %v1550_v24 }
 0x21c   :  { %570 = vmatprep.subr.mxu0 %v1553_v26 }
 0x21d   :  { %571 = vmatpush1.msra.mxu0 %v1556_v28 }
 0x21e   :  { %572 = vmatprep.subr.mxu0 %v1559_v30 }
 0x21f   :  { %573 = vmatpush1.msra.mxu0 %v1562_v32 }
 0x220   :  { %787 = vmatprep.subr.mxu0 %v1519_v2 }
 0x2d0   :  { %v368_v15 = vpop.f32.mrf.mxu0 }
 0x2d1   :  { %v375_v17 = vrot.slane %v368_v15, 6 }
 0x2d2   :  { %v370_v19 = vpop.f32.mrf.mxu0 }
 0x2d3   :  { %v379_v21 = vadd.f32 %v375_v17, %v1616_v43  ;;  %v376_v23 = vrot.slane %v370_v19, 6 }
 0x2d5   :  { %v1244_v25 = vmul.f32 -1.442695, %v379_v21  ;;  %v380_v27 = vadd.f32 %v376_v23, %v1620_v46 }
 0x2d7   :  { %1317 = vpow2.f32 %v1244_v25  ;;  %v1245_v29 = vmul.f32 -1.442695, %v380_v27 }
 0x2d9   :  { %1319 = vpow2.f32 %v1245_v29 }
 0x2e4   :  { %v1318_v31 = vpop.eup %1317 }
 0x2e5   :  { %v389_v33 = vadd.f32 1.0, %v1318_v31 }
 0x2e6   :  { %v1320_v34 = vpop.eup %1319 }
 0x2e7   :  { %1321 = vrcp.f32 %v389_v33  ;;  %v390_v35 = vadd.f32 1.0, %v1320_v34 }
 0x2e8   :  { %1323 = vtanh.f32 %v380_v27 }
 0x2e9   :  { %1325 = vrcp.f32 %v390_v35 }
 0x2f4   :  { %v1322_v37 = vpop.eup %1321 }
 0x2f5   :  { %v1324_v38 = vpop.eup %1323  ;;  %v400_v41 = vmul.f32 %v1322_v37, %v398_v36 }
 0x2f6   :  { %v1326_v42 = vpop.eup %1325 }
 0x2f7   :  { %v396_v44 = vsel %vm172_vm1, %v1324_v38, %v1326_v42 }
 0x2f8   :  { %v401_v45 = vmul.f32 %v1322_v37, %v396_v44 }
 0x2fa   :  { %403 = vrot.lane.b32.xlu1 %v401_v45, %s1472_s2 }
 0x36c   :  { %v404_v47 = vpop.permute.xlu1 %403 }
 0x36d   :  { %v406_v48 = vadd.f32 %v404_v47, %v400_v41 }
 0x36f   :  { %1327 = vtanh.f32 %v406_v48  ;;  %v518_v5 = vrot.slane %v406_v48, 6 }
 0x37c   :  { %v1328_v49 = vpop.eup %1327 }
 0x37d   :  { %v1664_v50 = vmul.f32 %v1328_v49, %v396_v44 }
 0x37f   :  { %v417_v51 = vrot.slane %v1664_v50, 2 }
 0x381   :  { %418 = vrot.lane.b32.xlu1 %v417_v51, %s1472_s2 }
 0x3f3   :  { %v419_v52 = vpop.permute.xlu1 %418 }
 0x3f4   :  { %1246 = vmatmul.mubr.msk.f32.vlgmr.msra.gmra.mxu1 %vm82_vm0, %v419_v52 }
 0x3f5   :  { %679 = vmatpush1.msra.mxu1 %v1522_v4  ;;  %726 = vmatprep.mubr.f32.mxu1 %v1471_v0 }
 0x3f6   :  { %680 = vmatprep.subr.mxu1 %v1524_v6 }
 0x3f7   :  { %681 = vmatpush1.msra.mxu1 %v1527_v8 }
 0x3f8   :  { %682 = vmatprep.subr.mxu1 %v1530_v10 }
 0x3f9   :  { %683 = vmatpush1.msra.mxu1 %v1532_v12 }
 0x3fa   :  { %684 = vmatprep.subr.mxu1 %v1535_v14 }
 0x3fb   :  { %685 = vmatpush1.msra.mxu1 %v1538_v16 }
 0x3fc   :  { %686 = vmatprep.subr.mxu1 %v1541_v18 }
 0x3fd   :  { %687 = vmatpush1.msra.mxu1 %v1544_v20 }
 0x3fe   :  { %688 = vmatprep.subr.mxu1 %v1547_v22 }
 0x3ff   :  { %689 = vmatpush1.msra.mxu1 %v1550_v24 }
 0x400   :  { %690 = vmatprep.subr.mxu1 %v1553_v26 }
 0x401   :  { %691 = vmatpush1.msra.mxu1 %v1556_v28 }
 0x402   :  { %692 = vmatprep.subr.mxu1 %v1559_v30 }
 0x403   :  { %693 = vmatpush1.msra.mxu1 %v1562_v32 }
 0x404   :  { %905 = vmatprep.subr.mxu1 %v1519_v2 }
 0x4b4   :  { %v488_v53 = vpop.f32.mrf.mxu1 }
 0x4b5   :  { %v495_v54 = vrot.slane %v488_v53, 4 }
 0x4b6   :  { %v490_v55 = vpop.f32.mrf.mxu1 }
 0x4b7   :  { %v499_v57 = vadd.f32 %v495_v54, %v1616_v43  ;;  %v496_v58 = vrot.slane %v490_v55, 4 }
 0x4b9   :  { %v1247_v59 = vmul.f32 -1.442695, %v499_v57  ;;  %v500_v60 = vadd.f32 %v496_v58, %v1620_v46 }
 0x4bb   :  { %1329 = vpow2.f32 %v1247_v59  ;;  %v1248_v61 = vmul.f32 -1.442695, %v500_v60 }
 0x4bd   :  { %1331 = vpow2.f32 %v1248_v61 }
 0x4c8   :  { %v1330_v62 = vpop.eup %1329 }
 0x4c9   :  { %v509_v63 = vadd.f32 1.0, %v1330_v62  ;;  %v1741_v62 = vadd.f32 %v1655_v11, %v1611_v39 }
 0x4ca   :  { %v1332_v1 = vpop.eup %1331 }
 0x4cb   :  { %1333 = vrcp.f32 %v509_v63  ;;  %v510_v3 = vadd.f32 1.0, %v1332_v1  ;;  %v1745_v1 = vadd.f32 %v1657_v13, %v1613_v40 }
 0x4cc   :  { %1335 = vtanh.f32 %v500_v60 }
 0x4cd   :  { %1337 = vrcp.f32 %v510_v3 }
 0x4d8   :  { %v1334_v7 = vpop.eup %1333 }
 0x4d9   :  { %v1336_v9 = vpop.eup %1335  ;;  %v520_v15 = vmul.f32 %v1334_v7, %v518_v5 }
 0x4da   :  { %v1338_v17 = vpop.eup %1337 }
 0x4db   :  { %v516_v19 = vsel %vm172_vm1, %v1336_v9, %v1338_v17 }
 0x4dc   :  { %v521_v21 = vmul.f32 %v1334_v7, %v516_v19 }
 0x4de   :  { %523 = vrot.lane.b32.xlu0 %v521_v21, %s1472_s2 }
 0x550   :  { %v524_v23 = vpop.permute.xlu0 %523 }
 0x551   :  { %v526_v25 = vadd.f32 %v524_v23, %v520_v15 }
 0x553   :  { %1339 = vtanh.f32 %v526_v25 }
 0x560   :  { %v1340_v27 = vpop.eup %1339 }
 0x561   :  { %v1691_v29 = vmul.f32 %v1340_v27, %v516_v19 }
 0x563   :  { %v537_v31 = vrot.slane %v1691_v29, 4 }
 0x565   :  { %538 = vrot.lane.b32.xlu1 %v537_v31, %s1472_s2 }
 0x5d7   :  { %v539_v33 = vpop.permute.xlu1 %538 }
 0x5d8   :  { %1249 = vmatmul.mubr.msk.f32.vlgmr.msra.gmra.mxu0 %vm82_vm0, %v539_v33 }
 0x5d9   :  { %788 = vmatpush1.msra.mxu0 %v1522_v4  ;;  %835 = vmatprep.mubr.f32.mxu0 %v1471_v0 }
 0x5da   :  { %789 = vmatprep.subr.mxu0 %v1524_v6 }
 0x5db   :  { %790 = vmatpush1.msra.mxu0 %v1527_v8 }
 0x5dc   :  { %791 = vmatprep.subr.mxu0 %v1530_v10 }
 0x5dd   :  { %792 = vmatpush1.msra.mxu0 %v1532_v12 }
 0x5de   :  { %793 = vmatprep.subr.mxu0 %v1535_v14 }
 0x5df   :  { %794 = vmatpush1.msra.mxu0 %v1538_v16 }
 0x5e0   :  { %795 = vmatprep.subr.mxu0 %v1541_v18 }
 0x5e1   :  { %796 = vmatpush1.msra.mxu0 %v1544_v20 }
 0x5e2   :  { %797 = vmatprep.subr.mxu0 %v1547_v22 }
 0x5e3   :  { %798 = vmatpush1.msra.mxu0 %v1550_v24 }
 0x5e4   :  { %799 = vmatprep.subr.mxu0 %v1553_v26 }
 0x5e5   :  { %800 = vmatpush1.msra.mxu0 %v1556_v28 }
 0x5e6   :  { %801 = vmatprep.subr.mxu0 %v1559_v30 }
 0x5e7   :  { %802 = vmatpush1.msra.mxu0 %v1562_v32 }
 0x5e8   :  { %1023 = vmatprep.subr.mxu0 %v1519_v2  ;;  %v638_v2 = vrot.slane %v526_v25, 6 }
 0x698   :  { %v608_v34 = vpop.f32.mrf.mxu0 }
 0x699   :  { %v615_v35 = vrot.slane %v608_v34, 2 }
 0x69a   :  { %v610_v36 = vpop.f32.mrf.mxu0 }
 0x69b   :  { %v619_v37 = vadd.f32 %v615_v35, %v1616_v43  ;;  %v616_v38 = vrot.slane %v610_v36, 2 }
 0x69d   :  { %v1250_v41 = vmul.f32 -1.442695, %v619_v37  ;;  %v620_v42 = vadd.f32 %v616_v38, %v1620_v46 }
 0x69f   :  { %1341 = vpow2.f32 %v1250_v41  ;;  %v1251_v44 = vmul.f32 -1.442695, %v620_v42 }
 0x6a1   :  { %1343 = vpow2.f32 %v1251_v44 }
 0x6ac   :  { %v1342_v45 = vpop.eup %1341 }
 0x6ad   :  { %v629_v47 = vadd.f32 1.0, %v1342_v45 }
 0x6ae   :  { %v1344_v48 = vpop.eup %1343 }
 0x6af   :  { %1345 = vrcp.f32 %v629_v47  ;;  %v630_v49 = vadd.f32 1.0, %v1344_v48 }
 0x6b0   :  { %1347 = vtanh.f32 %v620_v42 }
 0x6b1   :  { %1349 = vrcp.f32 %v630_v49 }
 0x6bc   :  { %v1346_v51 = vpop.eup %1345 }
 0x6bd   :  { %v1348_v52 = vpop.eup %1347  ;;  %v640_v53 = vmul.f32 %v1346_v51, %v638_v2 }
 0x6be   :  { %v1350_v54 = vpop.eup %1349 }
 0x6bf   :  { %v636_v43 = vsel %vm172_vm1, %v1348_v52, %v1350_v54 }
 0x6c0   :  { %v641_v55 = vmul.f32 %v1346_v51, %v636_v43 }
 0x6c2   :  { %643 = vrot.lane.b32.xlu0 %v641_v55, %s1472_s2 }
 0x734   :  { %v644_v46 = vpop.permute.xlu0 %643 }
 0x735   :  { %v646_v57 = vadd.f32 %v644_v46, %v640_v53 }
 0x737   :  { %1351 = vtanh.f32 %v646_v57  ;;  %v752_v11 = vrot.slane %v646_v57, 6 }
 0x744   :  { %v1352_v58 = vpop.eup %1351 }
 0x745   :  { %v1718_v59 = vmul.f32 %v1352_v58, %v636_v43 }
 0x747   :  { %v657_v60 = vrot.slane %v1718_v59, 6 }
 0x749   :  { %658 = vrot.lane.b32.xlu1 %v657_v60, %s1472_s2 }
 0x7bb   :  { %v659_v61 = vpop.permute.xlu1 %658 }
 0x7bc   :  { %1252 = vmatmul.mubr.msk.f32.vlgmr.msra.gmra.mxu1 %vm82_vm0, %v659_v61 }
 0x7bd   :  { %906 = vmatpush1.msra.mxu1 %v1522_v4  ;;  %953 = vmatprep.mubr.f32.mxu1 %v1471_v0 }
 0x7be   :  { %907 = vmatprep.subr.mxu1 %v1524_v6 }
 0x7bf   :  { %908 = vmatpush1.msra.mxu1 %v1527_v8 }
 0x7c0   :  { %909 = vmatprep.subr.mxu1 %v1530_v10 }
 0x7c1   :  { %910 = vmatpush1.msra.mxu1 %v1532_v12 }
 0x7c2   :  { %911 = vmatprep.subr.mxu1 %v1535_v14 }
 0x7c3   :  { %912 = vmatpush1.msra.mxu1 %v1538_v16 }
 0x7c4   :  { %913 = vmatprep.subr.mxu1 %v1541_v18 }
 0x7c5   :  { %914 = vmatpush1.msra.mxu1 %v1544_v20 }
 0x7c6   :  { %915 = vmatprep.subr.mxu1 %v1547_v22 }
 0x7c7   :  { %916 = vmatpush1.msra.mxu1 %v1550_v24 }
 0x7c8   :  { %917 = vmatprep.subr.mxu1 %v1553_v26 }
 0x7c9   :  { %918 = vmatpush1.msra.mxu1 %v1556_v28 }
 0x7ca   :  { %919 = vmatprep.subr.mxu1 %v1559_v30 }
 0x7cb   :  { %920 = vmatpush1.msra.mxu1 %v1562_v32 }
 0x87c   :  { %v728_v63 = vpop.f32.mrf.mxu1 }
 0x87d   :  { %v733_v3 = vadd.f32 %v728_v63, %v1741_v62 }
 0x87e   :  { %v730_v5 = vpop.f32.mrf.mxu1 }
 0x87f   :  { %v1253_v7 = vmul.f32 -1.442695, %v733_v3  ;;  %v734_v9 = vadd.f32 %v730_v5, %v1745_v1 }
 0x881   :  { %1353 = vpow2.f32 %v1253_v7  ;;  %v1254_v15 = vmul.f32 -1.442695, %v734_v9 }
 0x883   :  { %1355 = vpow2.f32 %v1254_v15 }
 0x88e   :  { %v1354_v17 = vpop.eup %1353 }
 0x88f   :  { %v743_v19 = vadd.f32 1.0, %v1354_v17 }
 0x890   :  { %v1356_v21 = vpop.eup %1355 }
 0x891   :  { %1357 = vrcp.f32 %v743_v19  ;;  %v744_v39 = vadd.f32 1.0, %v1356_v21 }
 0x892   :  { %1359 = vtanh.f32 %v734_v9 }
 0x893   :  { %1361 = vrcp.f32 %v744_v39 }
 0x89e   :  { %v1358_v23 = vpop.eup %1357 }
 0x89f   :  { %v1360_v40 = vpop.eup %1359  ;;  %v754_v13 = vmul.f32 %v1358_v23, %v752_v11 }
 0x8a0   :  { %v1362_v25 = vpop.eup %1361 }
 0x8a1   :  { %v750_v27 = vsel %vm172_vm1, %v1360_v40, %v1362_v25 }
 0x8a2   :  { %v755_v31 = vmul.f32 %v1358_v23, %v750_v27 }
 0x8a4   :  { %757 = vrot.lane.b32.xlu0 %v755_v31, %s1472_s2 }
 0x916   :  { %v758_v33 = vpop.permute.xlu0 %757 }
 0x917   :  { %v760_v34 = vadd.f32 %v758_v33, %v754_v13 }
 0x919   :  { %1363 = vtanh.f32 %v760_v34 }
 0x926   :  { %v1364_v35 = vpop.eup %1363 }
 0x927   :  { %v762_v36 = vmul.f32 %v1364_v35, %v750_v27 }
 0x929   :  { %764 = vrot.lane.b32.xlu1 %v762_v36, %s1472_s2 }
 0x99b   :  { %v1753_v37 = vpop.permute.xlu1 %764 }
 0x99c   :  { %1255 = vmatmul.mubr.msk.f32.vlgmr.msra.gmra.mxu0 %vm82_vm0, %v1753_v37 }
 0x99d   :  { %1024 = vmatpush1.msra.mxu0 %v1522_v4  ;;  %1071 = vmatprep.mubr.f32.mxu0 %v1471_v0 }
 0x99e   :  { %1025 = vmatprep.subr.mxu0 %v1524_v6 }
 0x99f   :  { %1026 = vmatpush1.msra.mxu0 %v1527_v8 }
 0x9a0   :  { %1027 = vmatprep.subr.mxu0 %v1530_v10 }
 0x9a1   :  { %1028 = vmatpush1.msra.mxu0 %v1532_v12 }
 0x9a2   :  { %1029 = vmatprep.subr.mxu0 %v1535_v14 }
 0x9a3   :  { %1030 = vmatpush1.msra.mxu0 %v1538_v16 }
 0x9a4   :  { %1031 = vmatprep.subr.mxu0 %v1541_v18 }
 0x9a5   :  { %1032 = vmatpush1.msra.mxu0 %v1544_v20 }
 0x9a6   :  { %1033 = vmatprep.subr.mxu0 %v1547_v22 }
 0x9a7   :  { %1034 = vmatpush1.msra.mxu0 %v1550_v24 }
 0x9a8   :  { %1035 = vmatprep.subr.mxu0 %v1553_v26  ;;  %v867_v26 = vrot.slane %v760_v34, 6 }
 0x9a9   :  { %1036 = vmatpush1.msra.mxu0 %v1556_v28 }
 0x9aa   :  { %1037 = vmatprep.subr.mxu0 %v1559_v30 }
 0x9ab   :  { %1038 = vmatpush1.msra.mxu0 %v1562_v32 }
 0xa5c   :  { %v837_v0 = vpop.f32.mrf.mxu0 }
 0xa5d   :  { %v844_v4 = vrot.slane %v837_v0, 6 }
 0xa5e   :  { %v839_v6 = vpop.f32.mrf.mxu0 }
 0xa5f   :  { %v848_v8 = vadd.f32 %v844_v4, %v1741_v62  ;;  %v845_v10 = vrot.slane %v839_v6, 6 }
 0xa61   :  { %v1256_v12 = vmul.f32 -1.442695, %v848_v8  ;;  %v849_v14 = vadd.f32 %v845_v10, %v1745_v1 }
 0xa63   :  { %1365 = vpow2.f32 %v1256_v12  ;;  %v1257_v16 = vmul.f32 -1.442695, %v849_v14 }
 0xa65   :  { %1367 = vpow2.f32 %v1257_v16 }
 0xa70   :  { %v1366_v18 = vpop.eup %1365 }
 0xa71   :  { %v858_v20 = vadd.f32 1.0, %v1366_v18 }
 0xa72   :  { %v1368_v22 = vpop.eup %1367 }
 0xa73   :  { %1369 = vrcp.f32 %v858_v20  ;;  %v859_v24 = vadd.f32 1.0, %v1368_v22 }
 0xa74   :  { %1371 = vtanh.f32 %v849_v14 }
 0xa75   :  { %1373 = vrcp.f32 %v859_v24  ;;  %v1128_v24 = vld [vmem:[%s1857_s4 + $0x30] sm:$0xff] }
 0xa80   :  { %v1370_v28 = vpop.eup %1369 }
 0xa81   :  { %v1372_v30 = vpop.eup %1371  ;;  %v869_v32 = vmul.f32 %v1370_v28, %v867_v26 }
 0xa82   :  { %v1374_v38 = vpop.eup %1373 }
 0xa83   :  { %v865_v41 = vsel %vm172_vm1, %v1372_v30, %v1374_v38  ;;  %v1124_v38 = vld [vmem:[%s1857_s4 + $0x10] sm:$0xff] }
 0xa84   :  { %v870_v42 = vmul.f32 %v1370_v28, %v865_v41 }
 0xa86   :  { %872 = vrot.lane.b32.xlu0 %v870_v42, %s1472_s2  ;;  %v1123_v42 = vld [vmem:[%s1857_s4 + $0x8] sm:$0xff] }
 0xaf8   :  { %v873_v44 = vpop.permute.xlu0 %872 }
 0xaf9   :  { %v875_v45 = vadd.f32 %v873_v44, %v869_v32  ;;  %v1125_v32 = vld [vmem:[%s1857_s4 + $0x18] sm:$0xff]  ;;  %v1122_v44 = vld [vmem:[%s1857_s4] sm:$0xff] }
 0xafb   :  { %1375 = vtanh.f32 %v875_v45  ;;  %v985_v3 = vrot.slane %v875_v45, 6 }
 0xb08   :  { %v1376_v47 = vpop.eup %1375 }
 0xb09   :  { %v1778_v48 = vmul.f32 %v1376_v47, %v865_v41 }
 0xb0b   :  { %v884_v49 = vrot.slane %v1778_v48, 2 }
 0xb0d   :  { %885 = vrot.lane.b32.xlu1 %v884_v49, %s1472_s2 }
 0xb7f   :  { %v886_v2 = vpop.permute.xlu1 %885 }
 0xb80   :  { %1258 = vmatmul.mubr.msk.f32.vlgmr.msra.gmra.mxu1 %vm82_vm0, %v886_v2 }
 0xc40   :  { %v955_v51 = vpop.f32.mrf.mxu1 }
 0xc41   :  { %v962_v52 = vrot.slane %v955_v51, 4  ;;  %v1264_v51 = vld [vmem:[%s1858_s5] ss:$0 sm:$0xff] }
 0xc42   :  { %v957_v53 = vpop.f32.mrf.mxu1 }
 0xc43   :  { %v966_v54 = vadd.f32 %v962_v52, %v1741_v62  ;;  %v963_v43 = vrot.slane %v957_v53, 4 }
 0xc45   :  { %v1259_v55 = vmul.f32 -1.442695, %v966_v54  ;;  %v967_v46 = vadd.f32 %v963_v43, %v1745_v1 }
 0xc47   :  { %1377 = vpow2.f32 %v1259_v55  ;;  %v1260_v57 = vmul.f32 -1.442695, %v967_v46 }
 0xc49   :  { %1379 = vpow2.f32 %v1260_v57 }
 0xc54   :  { %v1378_v58 = vpop.eup %1377 }
 0xc55   :  { %v976_v60 = vadd.f32 1.0, %v1378_v58 }
 0xc56   :  { %v1380_v61 = vpop.eup %1379 }
 0xc57   :  { %1381 = vrcp.f32 %v976_v60  ;;  %v977_v63 = vadd.f32 1.0, %v1380_v61 }
 0xc58   :  { %1383 = vtanh.f32 %v967_v46 }
 0xc59   :  { %1385 = vrcp.f32 %v977_v63 }
 0xc64   :  { %v1382_v5 = vpop.eup %1381 }
 0xc65   :  { %v1384_v7 = vpop.eup %1383  ;;  %v987_v9 = vmul.f32 %v1382_v5, %v985_v3 }
 0xc66   :  { %v1386_v15 = vpop.eup %1385 }
 0xc67   :  { %v983_v17 = vsel %vm172_vm1, %v1384_v7, %v1386_v15 }
 0xc68   :  { %v988_v19 = vmul.f32 %v1382_v5, %v983_v17 }
 0xc6a   :  { %990 = vrot.lane.b32.xlu0 %v988_v19, %s1472_s2 }
 0xcdc   :  { %v991_v21 = vpop.permute.xlu0 %990 }
 0xcdd   :  { %v993_v39 = vadd.f32 %v991_v21, %v987_v9 }
 0xcdf   :  { %1387 = vtanh.f32 %v993_v39  ;;  %v1103_v12 = vrot.slane %v993_v39, 6 }
 0xcec   :  { %v1388_v11 = vpop.eup %1387 }
 0xced   :  { %v995_v23 = vmul.f32 %v1388_v11, %v983_v17 }
 0xcef   :  { %v1002_v40 = vrot.slane %v995_v23, 4 }
 0xcf1   :  { %1003 = vrot.lane.b32.xlu1 %v1002_v40, %s1472_s2 }
 0xcf5   :  { %410 = vrot.lane.b32.xlu1 %v1664_v50, %s1472_s2 }
 0xcf9   :  { %650 = vrot.lane.b32.xlu1 %v1718_v59, %s1472_s2 }
 0xcfd   :  { %997 = vrot.lane.b32.xlu1 %v995_v23, %s1472_s2 }
 0xd63   :  { %v1004_v13 = vpop.permute.xlu1 %1003 }
 0xd64   :  { %1261 = vmatmul.mubr.msk.f32.vlgmr.msra.gmra.mxu0 %vm82_vm0, %v1004_v13 }
 0xd67   :  { %v411_v25 = vpop.permute.xlu1 %410 }
 0xd68   :  { %414 = vst.msk [vmem:[#allocation2] sm:$0xc] %vm413_vm4, %v411_v25 }
 0xd69   :  { %416 = vst.msk [vmem:[#allocation2 + $0xa] sm:$0xc] %vm415_vm5, %v411_v25 }
 0xd6b   :  { %v651_v27 = vpop.permute.xlu1 %650 }
 0xd6c   :  { %654 = vst.msk [vmem:[#allocation2] sm:$0xc0] %vm653_vm6, %v651_v27 }
 0xd6d   :  { %656 = vst.msk [vmem:[#allocation2 + $0x2] sm:$0xc0] %vm655_vm7, %v651_v27 }
 0xd6e   :  { %767 = vst.msk [vmem:[#allocation2 + $0x8] sm:$0x3] %vm296_vm2, %v1753_v37 }
 0xd6f   :  { %768 = vst.msk [vmem:[#allocation2 + $0x6] sm:$0x3] %vm298_vm3, %v1753_v37  ;;  %v998_v50 = vpop.permute.xlu1 %997 }
 0xd70   :  { %1000 = vst.msk [vmem:[#allocation2 + $0x8] sm:$0x30] %vm533_vm8, %v998_v50 }
 0xd71   :  { %1001 = vst.msk [vmem:[#allocation2 - $0x2] sm:$0x30] %vm535_vm9, %v998_v50 }
 0xe24   :  { %v1073_v59 = vpop.f32.mrf.mxu0 }
 0xe25   :  { %v1080_v31 = vrot.slane %v1073_v59, 2 }
 0xe26   :  { %v1075_v33 = vpop.f32.mrf.mxu0 }
 0xe27   :  { %v1084_v34 = vadd.f32 %v1080_v31, %v1741_v62  ;;  %v1081_v35 = vrot.slane %v1075_v33, 2 }
 0xe29   :  { %v1262_v36 = vmul.f32 -1.442695, %v1084_v34  ;;  %v1085_v0 = vadd.f32 %v1081_v35, %v1745_v1  ;;  %v1129_v1 = vld [vmem:[%s1857_s4 + $0x38] sm:$0xff] }
 0xe2a   :  { %1277 = vmatprep.subr.mxu1 %v1129_v1 }
 0xe2b   :  { %1389 = vpow2.f32 %v1262_v36  ;;  %v1263_v4 = vmul.f32 -1.442695, %v1085_v0  ;;  %1278 = vmatpush3.msra.mxu1 %v1129_v1 }
 0xe2c   :  { %1279 = vmatprep.subr.mxu1 %v1128_v24 }
 0xe2d   :  { %1391 = vpow2.f32 %v1263_v4  ;;  %1280 = vmatpush3.msra.mxu1 %v1128_v24 }
 0xe2e   :  { %1281 = vmatprep.subr.mxu1 %v1127_v56 }
 0xe2f   :  { %1282 = vmatpush3.msra.mxu1 %v1127_v56 }
 0xe38   :  { %v1390_v37 = vpop.eup %1389 }
 0xe39   :  { %v1094_v6 = vadd.f32 1.0, %v1390_v37 }
 0xe3a   :  { %v1392_v8 = vpop.eup %1391 }
 0xe3b   :  { %1393 = vrcp.f32 %v1094_v6  ;;  %v1095_v10 = vadd.f32 1.0, %v1392_v8 }
 0xe3c   :  { %1395 = vtanh.f32 %v1085_v0 }
 0xe3d   :  { %1397 = vrcp.f32 %v1095_v10 }
 0xe48   :  { %v1394_v14 = vpop.eup %1393 }
 0xe49   :  { %v1396_v16 = vpop.eup %1395  ;;  %v1105_v18 = vmul.f32 %v1394_v14, %v1103_v12 }
 0xe4a   :  { %v1398_v20 = vpop.eup %1397 }
 0xe4b   :  { %v1101_v62 = vsel %vm172_vm1, %v1396_v16, %v1398_v20 }
 0xe4c   :  { %v1106_v22 = vmul.f32 %v1394_v14, %v1101_v62 }
 0xe4e   :  { %1108 = vrot.lane.b32.xlu0 %v1106_v22, %s1472_s2 }
 0xe52   :  { %530 = vrot.lane.b32.xlu0 %v1691_v29, %s1472_s2  ;;  %v1126_v29 = vld [vmem:[%s1857_s4 + $0x20] sm:$0xff] }
 0xe53   :  { %1283 = vmatprep.subr.mxu1 %v1126_v29 }
 0xe54   :  { %1284 = vmatpush3.msra.mxu1 %v1126_v29 }
 0xe55   :  { %1285 = vmatprep.subr.mxu1 %v1125_v32 }
 0xe56   :  { %879 = vrot.lane.b32.xlu0 %v1778_v48, %s1472_s2  ;;  %1286 = vmatpush3.msra.mxu1 %v1125_v32 }
 0xe57   :  { %1287 = vmatprep.subr.mxu1 %v1124_v38 }
 0xe58   :  { %1288 = vmatpush3.msra.mxu1 %v1124_v38 }
 0xe59   :  { %1289 = vmatprep.subr.mxu1 %v1123_v42 }
 0xe5a   :  { %1290 = vmatpush3.msra.mxu1 %v1123_v42 }
 0xe5b   :  { %1291 = vmatprep.subr.mxu1 %v1122_v44 }
 0xe5c   :  { %1292 = vmatpush3.msra.mxu1 %v1122_v44 }
 0xec0   :  { %v1109_v26 = vpop.permute.xlu0 %1108 }
 0xec1   :  { %v1111_v28 = vadd.f32 %v1109_v26, %v1105_v18 }
 0xec3   :  { %1399 = vtanh.f32 %v1111_v28 }
 0xec4   :  { %v531_v30 = vpop.permute.xlu0 %530 }
 0xec5   :  { %534 = vst.msk [vmem:[#allocation2] sm:$0x30] %vm533_vm8, %v531_v30 }
 0xec6   :  { %536 = vst.msk [vmem:[#allocation2 + $0x6] sm:$0x30] %vm535_vm9, %v531_v30 }
 0xec8   :  { %v880_v41 = vpop.permute.xlu0 %879 }
 0xec9   :  { %882 = vst.msk [vmem:[#allocation2 + $0x8] sm:$0xc] %vm413_vm4, %v880_v41 }
 0xeca   :  { %883 = vst.msk [vmem:[#allocation2 + $0x2] sm:$0xc] %vm415_vm5, %v880_v41 }
 0xed0   :  { %v1400_v45 = vpop.eup %1399 }
 0xed1   :  { %v1113_v47 = vmul.f32 %v1400_v45, %v1101_v62 }
 0xed3   :  { %1115 = vrot.lane.b32.xlu0 %v1113_v47, %s1472_s2 }
 0xf45   :  { %v1116_v48 = vpop.permute.xlu0 %1115 }
 0xf46   :  { %1118 = vst.msk [vmem:[#allocation2 + $0x8] sm:$0xc0] %vm653_vm6, %v1116_v48 }
 0xf47   :  { %1119 = vst.msk [vmem:[#allocation2 - $0x6] sm:$0xc0] %vm655_vm7, %v1116_v48 }
 0xf4d   :  { %v1121_v2 = vld [vmem:[#allocation2 + $0x8] sm:$0xff] }
 0xf4e   :  { %v1120_v49 = vld [vmem:[#allocation2] sm:$0xff] }
 0xf4f   :  { %1293 = vmatprep.mubr.msk.f32.mxu1 %vm82_vm0, %v1120_v49 }
 0xf50   :  { %1294 = vmatmul.mubr.msk.f32.vlgmr.msra.gmra.mxu1 %vm82_vm0, %v1121_v2 }
0x1010   :  { %v1295_v52 = vpop.f32.mrf.mxu1 }
0x1011   :  { %v1215_v53 = vadd.f32 %v1295_v52, %v1264_v51 }
0x1012   :  { %v1209_v54 = vpop.f32.mrf.mxu1 }
0x1013   :  { %1220 = vst.msk [vmem:[#allocation8 + $0x8] sm:$0xff] %vm1218_vm10, %v1215_v53  ;;  %v1210_v43 = vadd.f32 %v1264_v51, %v1209_v54 }
0x1015   :  { %1219 = vst.msk [vmem:[#allocation8] sm:$0xff] %vm1218_vm10, %v1210_v43 }
0x1016   :  { %1452 = shalt.err (!%p1449_p0)
}
0x1017   :  { %s1474_s8 = smov 128   ;;  %s1475_s1 = smov 8  }
0x1018   :  { %1232 = dma.vmem_to_hbm [thread:$0]  %s1227_s30, 256, %s1859_s6, [#allocation5], %s1474_s8, %s1474_s8, %s1475_s1  }
0x1019   :  { %1465 = dma.done.wait [#allocation5], 256  }
0x101a   :  { %1466 = vsyncadd [#allocation5], 4294967040 }
0x101b   :  { %1236 = vsyncpa [#allocation4], 1 }
0x101c   :  { %1237 = vsyncpa [#allocation7], 1 }
0x101d   :  { %1238 = vsyncpa [#allocation5], 1 }

</bundles_post_ra>
